<compile_context>
chip_gen: v5e
topology: v5e:2x2
jax: 0.10.0
libtpu: 0.0.40
codegen_flags: <defaults>
</compile_context>

<pallas_src>
import functools
import math

import jax
import jax.numpy as jnp
from jax.experimental import pallas as pl
from jax.experimental.pallas import tpu as pltpu


# ---------------------------------------------------------------------------
# Kernel
# ---------------------------------------------------------------------------
def _make_kernel(*, p: float, training: bool, has_bias: bool,
                 block_rows: int, width: int, paired: bool):
    """Builds one grid step of the fused elementwise op on a (block_rows, width) tile."""
    p = float(p)

    def kernel(seed_ref, *refs):
        if has_bias:
            x_ref, bias_ref, res_ref, o_ref = refs
        else:
            x_ref, res_ref, o_ref = refs

        a = x_ref[...]
        if has_bias:
            a = a + bias_ref[...]              # (1, W) bias broadcasts over rows

        if training and p > 0.0:
            base_row = pl.program_id(0) * block_rows
            seed = seed_ref[0].astype(jnp.uint32)
            seed_mix = (seed + jnp.uint32(1)) * jnp.uint32(0x9E3779B9)

            def _mix(h):
                # lowbias32-style integer mixer (pure VPU int ops).
                h = (h ^ (h >> 16)) * jnp.uint32(0x7FEB352D)
                h = (h ^ (h >> 15)) * jnp.uint32(0x846CA68B)
                return h ^ (h >> 16)

            if paired:
                # One hash per PAIR of elements: (r, c) pairs with (r, c + W/2).
                # counter = r*(W/2) + c is unique per pair, independent of tile
                # size and grid execution order -> "parallel" semantics are safe.
                half_w = width // 2
                hshape = (a.shape[0], half_w)
                row = jax.lax.broadcasted_iota(jnp.int32, hshape, 0) + base_row
                col = jax.lax.broadcasted_iota(jnp.int32, hshape, 1)
                # (int32 wrap for >2^32 element pairs only perturbs the hash input)
                ctr = (row * half_w + col).astype(jnp.uint32)
                h = _mix(ctr + seed_mix)
                # low 16 bits -> left half, high 16 bits -> right half; both
                # halves are multiples of 128 lanes so the concat is layout-only.
                u16 = jnp.concatenate([h & jnp.uint32(0xFFFF), h >> 16], axis=-1)
                thresh = jnp.uint32(min(max(int(round(p * 65536.0)), 0), 65535))
                keep = u16 >= thresh           # P(keep) = 1 - p  (16-bit resolution)
            else:
                row = jax.lax.broadcasted_iota(jnp.int32, a.shape, 0) + base_row
                col = jax.lax.broadcasted_iota(jnp.int32, a.shape, 1)
                ctr = (row * width + col).astype(jnp.uint32)
                h = _mix(ctr + seed_mix)
                thresh = jnp.uint32(min(int(p * 4294967296.0), 4294967295))
                keep = h >= thresh             # P(keep) = 1 - p  (32-bit resolution)

            # Single scale multiply in f32 (avoids the ~0.4% bf16 rounding of
            # 1/(1-p)); everything else stays in the input dtype.
            scale = jnp.float32(1.0 / (1.0 - p))
            kept = (a.astype(jnp.float32) * scale).astype(a.dtype)
            a = jnp.where(keep, kept, jnp.zeros_like(a))

        o_ref[...] = (a + res_ref[...]).astype(o_ref.dtype)

    return kernel


# ---------------------------------------------------------------------------
# Wrapper helpers
# ---------------------------------------------------------------------------
def _round_up(x: int, m: int) -> int:
    return ((x + m - 1) // m) * m


def _choose_fold(m_rows: int, h: int, has_bias: bool, max_width: int = 4096):
    """Pick a lane-dense folded 2D layout (rows, width).

    Returns None when no lane-dense fold exists (fall back to [M, H])."""
    n = m_rows * h
    if has_bias:
        # width must be k*H (bias tiles exactly), a multiple of 128, with k | M.
        k0 = 128 // math.gcd(h, 128)
        best, best256 = None, None
        k = k0
        while k * h <= max_width:
            if m_rows % k == 0:
                best = k
                if (k * h) % 256 == 0:
                    best256 = k                # prefer widths enabling the paired hash
            k += k0
        k = best256 if best256 is not None else best
        if k is None:
            return None
        return (m_rows // k, k * h)
    else:
        # Pure elementwise: fold the fully flattened array.  Width only needs
        # to divide M*H and be a multiple of 128 (prefer 256 for paired hash).
        if n % 128 != 0:
            return None
        q = n // 128
        cap = min(max_width // 128, q)
        best, best256 = None, None
        for m in range(cap, 0, -1):
            if q % m == 0:
                if best is None:
                    best = m
                if m % 2 == 0 and best256 is None:
                    best256 = m
                if best is not None and best256 is not None:
                    break
        m = best256 if best256 is not None else best
        if m is None:
            return None
        w = 128 * m
        return (n // w, w)


def _pick_block_rows(n_rows: int, width: int, dtype) -> int:
    """Largest sublane-aligned row tile that (a) keeps 3 streamed arrays x 2
    pipeline buffers under ~24 MiB and (b) leaves >= 2 grid steps when the row
    axis is splittable (so v7x can shard the 'parallel' axis over its 2 TCs)."""
    itemsize = jnp.dtype(dtype).itemsize
    sublane = {4: 8, 2: 16, 1: 32}.get(itemsize, 8)
    vmem_budget = 24 * 1024 * 1024           # 0.75 of the explicit 32 MiB limit
    per_buffer = vmem_budget // 6            # x, residual, out; each double-buffered
    rows = max(per_buffer // max(width * itemsize, 1), 1)
    if n_rows > sublane:
        half = _round_up((n_rows + 1) // 2, sublane)   # always < n_rows here
        rows = min(rows, half)
    rows = (rows // sublane) * sublane
    if rows < sublane:
        rows = sublane
    if rows >= n_rows:
        return n_rows                         # full-dim block is always legal
    return rows


def fused_bias_dropout_res(x, bias, residual, *, p: float, training: bool,
                           seed: int = 0, block_rows=None):
    """Flattens leading dims, lane-folds, tiles rows, calls the kernel."""
    orig_shape = x.shape
    H = int(orig_shape[-1])
    M = 1
    for d in orig_shape[:-1]:
        M *= int(d)

    has_bias = bias is not None
    dtype = x.dtype

    fold = _choose_fold(M, H, has_bias)
    if fold is None:
        # Fallback: full-H blocks (legal; stores are masked if H % 128 != 0).
        R, W = M, H
    else:
        R, W = fold

    x2 = x.reshape(R, W)
    r2 = residual.reshape(R, W)

    operands = [x2]
    in_specs = []
    if block_rows is None:
        block_rows = _pick_block_rows(R, W, dtype)
    grid = (pl.cdiv(R, block_rows),)

    in_specs.append(pl.BlockSpec((block_rows, W), lambda i, seed: (i, 0)))   # x
    if has_bias:
        b = bias.astype(dtype)
        k = W // H
        b2 = (jnp.tile(b, (k,)) if k > 1 else b).reshape(1, W)
        operands.append(b2)
        in_specs.append(pl.BlockSpec((1, W), lambda i, seed: (0, 0)))        # bias
    operands.append(r2)
    in_specs.append(pl.BlockSpec((block_rows, W), lambda i, seed: (i, 0)))   # residual

    paired = bool(training) and float(p) > 0.0 and (W % 256 == 0)

    kernel = _make_kernel(p=float(p), training=bool(training), has_bias=has_bias,
                          block_rows=block_rows, width=W, paired=paired)

    seed_arr = jnp.asarray([seed], dtype=jnp.int32)

    out2 = pl.pallas_call(
        kernel,
        out_shape=jax.ShapeDtypeStruct((R, W), dtype),
        grid_spec=pltpu.PrefetchScalarGridSpec(
            num_scalar_prefetch=1,               # seed lands in SMEM
            grid=grid,
            in_specs=in_specs,
            out_specs=pl.BlockSpec((block_rows, W), lambda i, seed: (i, 0)),
        ),
        compiler_params=pltpu.CompilerParams(
            dimension_semantics=("parallel",),   # order-independent mask -> TC sharding
            vmem_limit_bytes=32 * 1024 * 1024,
        ),
    )(seed_arr, *operands)

    return out2.reshape(orig_shape)


# ---------------------------------------------------------------------------
# Module port (forward only)
# ---------------------------------------------------------------------------
class NVFusedBiasDropoutRes:
    """JAX/Pallas port of xformers NVFusedBiasDropoutRes (forward only)."""

    def __init__(self, p: float, bias_shape=None):
        self.p = float(p)
        self.requires_residual = True
        assert self.p < 1.0, (
            f"We don't want to drop all the values, most probably p={self.p} is not properly set"
        )
        # Deterministic init: zeros, exactly as the PyTorch module does.
        self.bias = (jnp.zeros((bias_shape,), dtype=jnp.float32)
                     if bias_shape is not None else None)
        self.training = True
        self._calls = 0      # advances the dropout stream when no seed is given

    def init_weights(self, *args, **kwargs):
        if self.bias is not None:
            self.bias = jnp.zeros_like(self.bias)

    def eval(self):
        self.training = False
        return self

    def train(self):
        self.training = True
        return self

    def __call__(self, x, residual, seed=None):
        # TODO(synk): PyTorch's AOTAutograd/nvFuser compile path and torch RNG
        # stream are not reproduced; only the forward math is.
        if seed is None:
            seed = self._calls               # fresh mask per call (like torch RNG)
            self._calls += 1
        return fused_bias_dropout_res(
            x, self.bias, residual, p=self.p, training=self.training, seed=int(seed))


# ---------------------------------------------------------------------------
# Demo / self-check
# ---------------------------------------------------------------------------
if __name__ == "__main__":
    key = jax.random.PRNGKey(0)
    kx, kr = jax.random.split(key)
    B, S, H = 2, 8, 32
    x = jax.random.normal(kx, (B, S, H), dtype=jnp.float32)
    residual = jax.random.normal(kr, (B, S, H), dtype=jnp.float32)

    # ---- with bias --------------------------------------------------------
    module = NVFusedBiasDropoutRes(p=0.1, bias_shape=H)

    out_train = jax.block_until_ready(module(x, residual, seed=1234))
    assert out_train.shape == x.shape
    assert bool(jnp.all(jnp.isfinite(out_train)))

    # Every element must be either "kept" ((x+b)/(1-p) + res) or "dropped" (res).
    scale = 1.0 / (1.0 - module.p)
    bias_b = module.bias.reshape(1, 1, H).astype(x.dtype)
    kept_ref = (x + bias_b) * jnp.float32(scale) + residual
    drop_ref = residual
    is_kept = jnp.isclose(out_train, kept_ref, atol=1e-5, rtol=1e-5)
    is_drop = jnp.isclose(out_train, drop_ref, atol=1e-5, rtol=1e-5)
    assert bool(jnp.all(is_kept | is_drop))
    n_drop = int(jnp.sum(~is_kept))
    assert 0 < n_drop < x.size            # some, but not all, elements dropped (p=0.1)

    # Eval mode: exact, deterministic -> compare against pure-JAX reference.
    module.eval()
    out_eval = jax.block_until_ready(module(x, residual))
    ref_eval = (x + bias_b) + residual
    assert jnp.allclose(out_eval, ref_eval, atol=1e-6, rtol=1e-6)

    # ---- no bias (flat lane-folded, bias-free specialized path) -----------
    module2 = NVFusedBiasDropoutRes(p=0.25)
    out2 = jax.block_until_ready(module2(x, residual, seed=7))
    kept2 = x * jnp.float32(1.0 / 0.75) + residual
    k2 = jnp.isclose(out2, kept2, atol=1e-5, rtol=1e-5)
    d2 = jnp.isclose(out2, residual, atol=1e-5, rtol=1e-5)
    assert bool(jnp.all(k2 | d2))
    assert 0 < int(jnp.sum(~k2)) < x.size

    module2.eval()
    out2_eval = jax.block_until_ready(module2(x, residual))
    assert jnp.allclose(out2_eval, x + residual, atol=1e-6, rtol=1e-6)

    print("KERNEL_OK")
</pallas_src>

<mosaic_0001>
module attributes {stable_mosaic.version = 11 : i64} {
  func.func @kernel(%arg0: i32, %arg1: memref<1xi32, #tpu.memory_space<smem>>, %arg2: memref<1x512xf32, #tpu.memory_space<vmem>>, %arg3: memref<1x512xf32, #tpu.memory_space<vmem>>, %arg4: memref<1x512xf32, #tpu.memory_space<vmem>>, %arg5: memref<1x512xf32, #tpu.memory_space<vmem>>) attributes {dimension_semantics = [#tpu.dimension_semantics<parallel>], iteration_bounds = array<i64: 1>, scalar_prefetch = 1 : i64, scratch_operands = 0 : i64, tpu.core_type = #tpu.core_type<tc>, window_params = [{transform_indices = @transform_0, window_bounds = array<i64: 1, 512>}, {pipeline_mode = #tpu.pipeline_mode<synchronous>, transform_indices = @transform_1, window_bounds = array<i64: 1, 512>}, {transform_indices = @transform_2, window_bounds = array<i64: 1, 512>}, {transform_indices = @transform_3, window_bounds = array<i64: 1, 512>}]} {
    %c0 = arith.constant 0 : index
    %c0_0 = arith.constant 0 : index
    %0 = vector.load %arg2[%c0, %c0_0] : memref<1x512xf32, #tpu.memory_space<vmem>>, vector<1x512xf32>
    %c0_1 = arith.constant 0 : index
    %c0_2 = arith.constant 0 : index
    %1 = vector.load %arg3[%c0_1, %c0_2] : memref<1x512xf32, #tpu.memory_space<vmem>>, vector<1x512xf32>
    %2 = arith.addf %0, %1 : vector<1x512xf32>
    %c1_i32 = arith.constant 1 : i32
    %3 = arith.muli %arg0, %c1_i32 : i32
    %c0_3 = arith.constant 0 : index
    %4 = memref.load %arg1[%c0_3] : memref<1xi32, #tpu.memory_space<smem>>
    %c1_i32_4 = arith.constant 1 : i32
    %5 = arith.addi %4, %c1_i32_4 : i32
    %c-1640531527_i32 = arith.constant -1640531527 : i32
    %6 = arith.muli %5, %c-1640531527_i32 : i32
    %7 = tpu.iota {dimensions = array<i32: 0>} : vector<1x256xi32>
    %8 = vector.broadcast %3 : i32 to vector<1x256xi32>
    %9 = arith.addi %7, %8 : vector<1x256xi32>
    %10 = tpu.iota {dimensions = array<i32: 1>} : vector<1x256xi32>
    %c256_i32 = arith.constant 256 : i32
    %11 = vector.broadcast %c256_i32 : i32 to vector<1x256xi32>
    %12 = arith.muli %9, %11 : vector<1x256xi32>
    %13 = arith.addi %12, %10 : vector<1x256xi32>
    %14 = vector.broadcast %6 : i32 to vector<1x256xi32>
    %15 = arith.addi %13, %14 : vector<1x256xi32>
    %c16_i32 = arith.constant 16 : i32
    %16 = vector.broadcast %c16_i32 : i32 to vector<1x256xi32>
    %17 = arith.shrui %15, %16 : vector<1x256xi32>
    %18 = arith.xori %15, %17 : vector<1x256xi32>
    %c2146121005_i32 = arith.constant 2146121005 : i32
    %19 = vector.broadcast %c2146121005_i32 : i32 to vector<1x256xi32>
    %20 = arith.muli %18, %19 : vector<1x256xi32>
    %c15_i32 = arith.constant 15 : i32
    %21 = vector.broadcast %c15_i32 : i32 to vector<1x256xi32>
    %22 = arith.shrui %20, %21 : vector<1x256xi32>
    %23 = arith.xori %20, %22 : vector<1x256xi32>
    %c-2073254261_i32 = arith.constant -2073254261 : i32
    %24 = vector.broadcast %c-2073254261_i32 : i32 to vector<1x256xi32>
    %25 = arith.muli %23, %24 : vector<1x256xi32>
    %c16_i32_5 = arith.constant 16 : i32
    %26 = vector.broadcast %c16_i32_5 : i32 to vector<1x256xi32>
    %27 = arith.shrui %25, %26 : vector<1x256xi32>
    %28 = arith.xori %25, %27 : vector<1x256xi32>
    %c65535_i32 = arith.constant 65535 : i32
    %29 = vector.broadcast %c65535_i32 : i32 to vector<1x256xi32>
    %30 = arith.andi %28, %29 : vector<1x256xi32>
    %c16_i32_6 = arith.constant 16 : i32
    %31 = vector.broadcast %c16_i32_6 : i32 to vector<1x256xi32>
    %32 = arith.shrui %28, %31 : vector<1x256xi32>
    %33 = tpu.concatenate %30, %32 in 1 : vector<1x256xi32>, vector<1x256xi32> -> vector<1x512xi32>
    %c6554_i32 = arith.constant 6554 : i32
    %34 = vector.broadcast %c6554_i32 : i32 to vector<1x512xi32>
    %35 = arith.cmpi uge, %33, %34 : vector<1x512xi32>
    %cst = arith.constant 1.11111116 : f32
    %36 = vector.broadcast %cst : f32 to vector<1x512xf32>
    %37 = arith.mulf %2, %36 : vector<1x512xf32>
    %cst_7 = arith.constant 0.000000e+00 : f32
    %38 = vector.broadcast %cst_7 : f32 to vector<1x512xf32>
    %39 = arith.select %35, %37, %38 : vector<1x512xi1>, vector<1x512xf32>
    %c0_8 = arith.constant 0 : index
    %c0_9 = arith.constant 0 : index
    %40 = vector.load %arg4[%c0_8, %c0_9] : memref<1x512xf32, #tpu.memory_space<vmem>>, vector<1x512xf32>
    %41 = arith.addf %39, %40 : vector<1x512xf32>
    %c0_10 = arith.constant 0 : index
    %c0_11 = arith.constant 0 : index
    %42 = vector.load %arg5[%c0_10, %c0_11] : memref<1x512xf32, #tpu.memory_space<vmem>>, vector<1x512xf32>
    tpu.vector_store %arg5[%c0_10, %c0_11], %41 {strides = array<i32>} : memref<1x512xf32, #tpu.memory_space<vmem>>, vector<1x512xf32>,
    return
  }
  func.func @transform_0(%arg0: i32, %arg1: memref<1xi32, #tpu.memory_space<smem>>) -> (i32, i32) {
    %c0_i32 = arith.constant 0 : i32
    %c0_i32_0 = arith.constant 0 : i32
    return %arg0, %c0_i32 : i32, i32
  }
  func.func @transform_1(%arg0: i32, %arg1: memref<1xi32, #tpu.memory_space<smem>>) -> (i32, i32) {
    %c0_i32 = arith.constant 0 : i32
    %c0_i32_0 = arith.constant 0 : i32
    %c0_i32_1 = arith.constant 0 : i32
    return %c0_i32, %c0_i32_0 : i32, i32
  }
  func.func @transform_2(%arg0: i32, %arg1: memref<1xi32, #tpu.memory_space<smem>>) -> (i32, i32) {
    %c0_i32 = arith.constant 0 : i32
    %c0_i32_0 = arith.constant 0 : i32
    return %arg0, %c0_i32 : i32, i32
  }
  func.func @transform_3(%arg0: i32, %arg1: memref<1xi32, #tpu.memory_space<smem>>) -> (i32, i32) {
    %c0_i32 = arith.constant 0 : i32
    %c0_i32_0 = arith.constant 0 : i32
    return %arg0, %c0_i32 : i32, i32
  }
}

</mosaic_0001>

<bundles_post_ra>
// kernel: tpu_custom_call.1
= control target key start
LH: loop header
LB: loop body
LE: loop exit
PB: predicated region body
PF: predicated region fallthrough
CT: control target
= control target key end

     0   :  { %10 = vsyncpa [#allocation5], 0  ;;  %s331_s0 = inlined_call_operand.<no memory space> [shape: s32[1], index: 0, kind: input, shape index: {}]   ;;  %s332_s1 = inlined_call_operand.hbm [shape: f32[1,512], index: 1, kind: input, shape index: {}]   ;;  %s333_s2 = inlined_call_operand.hbm [shape: f32[1,512], index: 2, kind: input, shape index: {}]   ;;  %s334_s3 = inlined_call_operand.hbm [shape: f32[1,512], index: 3, kind: input, shape index: {}]   ;;  %s335_s4 = inlined_call_operand.hbm [shape: f32[1,512], index: 4, kind: output, shape index: {}]  }
   0x1   :  { %11 = vsyncpa [#allocation8], 0  ;;  %s29_s17 = sshll.u32 %s333_s2, 4  ;;  %s30_s17 = int_to_ptr.hbm [resolvable:$true] %s29_s17 }
   0x2   :  { %12 = vsyncpa [#allocation6], 0  ;;  %s284_s18 = smov [#allocation7]   ;;  %s18_s22 = sshll.u32 %s332_s1, 4  ;;  %s19_s22 = int_to_ptr.hbm [resolvable:$true] %s18_s22 }
   0x3   :  { %s31_s19 = sshll.u32 %s284_s18, 4  ;;  %s285_s23 = smov [#allocation4]   ;;  %s32_s19 = int_to_ptr.vmem [resolvable:$true] %s31_s19 }
   0x4   :  { %34 = dma.hbm_to_vmem [thread:$0]  %s30_s17, 64, %s32_s19, [#allocation8]  }
   0x5   :  { %s20_s24 = sshll.u32 %s285_s23, 4  ;;  %s40_s27 = sshll.u32 %s334_s3, 4  ;;  %s21_s24 = int_to_ptr.vmem [resolvable:$true] %s20_s24  ;;  %s41_s27 = int_to_ptr.hbm [resolvable:$true] %s40_s27 }
   0x6   :  { %23 = dma.hbm_to_vmem [thread:$0]  %s19_s22, 64, %s21_s24, [#allocation5]  }
   0x7   :  { %s286_s2 = smov [#allocation9]  }
   0x8   :  { %s42_s28 = sshll.u32 %s286_s2, 4  ;;  %s43_s28 = int_to_ptr.vmem [resolvable:$true] %s42_s28 }
   0x9   :  { %45 = dma.hbm_to_vmem [thread:$0]  %s41_s27, 64, %s43_s28, [#allocation8]  }
   0xa   :  { %278 = dma.done.wait [#allocation5], 64  }
   0xb   :  { %279 = vsyncadd [#allocation5], 4294967232 }
   0xc   :  { %280 = dma.done.wait [#allocation8], 128  }
   0xd   :  { %281 = vsyncadd [#allocation8], 4294967168  ;;  %s62_s30 = sadd.s32 1, %s331_s0  ;;  %v64_v0 = vlaneseq  ;;  %v58_v16 = vld [vmem:[#allocation4] sm:$0xf]  ;;  %vm144_vm4 = vcmask 1040384  }
   0xe   :  { %s63_s5 = smul.u32 2654435769, %s62_s30  ;;  %v59_v17 = vld [vmem:[#allocation7] sm:$0xf]  ;;  %v123_v27 = vld [vmem:[#allocation9] sm:$0xf] }
   0xf   :  { %v65_v1 = vshrl.u32 %v64_v0, 7  ;;  %v69_v2 = vand.u32 127, %v64_v0  ;;  %v60_v22 = vadd.f32 %v59_v17, %v58_v16  ;;  %v125_v31 = vperm.slane %v123_v27, 0  ;;  %s287_s0 = smov [#allocation10]   ;;  %s163_s8 = sshll.u32 %s335_s4, 4  ;;  %s164_s8 = int_to_ptr.hbm [resolvable:$true] %s163_s8 }
  0x10   :  { %v74_v5 = vstv %s63_s5  ;;  %v126_v32 = vperm.slane %v123_v27, 1  ;;  %v127_v33 = vperm.slane %v123_v27, 2  ;;  %v128_v46 = vperm.slane %v123_v27, 3  ;;  %s161_s3 = sshll.u32 %s287_s0, 4  ;;  %s162_s3 = int_to_ptr.vmem [resolvable:$true] %s161_s3 }
  0x11   :  { %v70_v3 = vadd.s32 128, %v69_v2  ;;  %v71_v4 = vmul.u32 256, %v65_v1  ;;  %v109_v28 = vmul.f32 1.1111112, %v60_v22  ;;  %vm146_vm5 = vcmask 1042434  }
  0x12   :  { %vm148_vm6 = vcmask 1041408   ;;  %vm153_vm7 = vcmp.lt.s32.totalorder %v64_v0, 512 }
  0x13   :  { %v72_v6 = vadd.s32 %v71_v4, %v69_v2  ;;  %v73_v7 = vadd.s32 %v71_v4, %v70_v3  ;;  %v111_v38 = vperm.slane %v109_v28, 0  ;;  %v112_v39 = vperm.slane %v109_v28, 1 }
  0x14   :  { %v113_v40 = vperm.slane %v109_v28, 2  ;;  %v114_v41 = vperm.slane %v109_v28, 3 }
  0x15   :  { %v75_v8 = vadd.s32 %v74_v5, %v72_v6  ;;  %v76_v9 = vadd.s32 %v74_v5, %v73_v7 }
  0x17   :  { %v77_v10 = vshrl.u32 %v75_v8, 16  ;;  %v78_v11 = vshrl.u32 %v76_v9, 16 }
  0x19   :  { %v79_v12 = vxor.u32 %v77_v10, %v75_v8  ;;  %v80_v13 = vxor.u32 %v78_v11, %v76_v9 }
  0x1b   :  { %v81_v14 = vmul.u32 2146121005, %v79_v12  ;;  %v82_v15 = vmul.u32 2146121005, %v80_v13 }
  0x1d   :  { %v83_v18 = vshrl.u32 %v81_v14, 15  ;;  %v84_v19 = vshrl.u32 %v82_v15, 15 }
  0x1f   :  { %v85_v20 = vxor.u32 %v83_v18, %v81_v14  ;;  %v86_v21 = vxor.u32 %v84_v19, %v82_v15 }
  0x21   :  { %v87_v23 = vmul.u32 2221713035, %v85_v20  ;;  %v88_v24 = vmul.u32 2221713035, %v86_v21 }
  0x23   :  { %v89_v25 = vshrl.u32 %v87_v23, 16  ;;  %v90_v26 = vshrl.u32 %v88_v24, 16 }
  0x25   :  { %v91_v29 = vxor.u32 %v89_v25, %v87_v23  ;;  %v92_v30 = vxor.u32 %v90_v26, %v88_v24 }
  0x27   :  { %v93_v34 = vand.u32 65535, %v91_v29  ;;  %v94_v35 = vand.u32 65535, %v92_v30  ;;  %v95_v36 = vshrl.u32 %v91_v29, 16  ;;  %v96_v37 = vshrl.u32 %v92_v30, 16 }
  0x29   :  { %v174_v42 = vxor.u32 2147483648, %v93_v34  ;;  %v175_v43 = vxor.u32 2147483648, %v94_v35  ;;  %v176_v44 = vxor.u32 2147483648, %v95_v36  ;;  %v177_v45 = vxor.u32 2147483648, %v96_v37 }
  0x2b   :  { %vm99_vm0 = vcmp.ge.s32.totalorder %v174_v42, 2147490202  ;;  %vm102_vm1 = vcmp.ge.s32.totalorder %v175_v43, 2147490202  ;;  %vm105_vm2 = vcmp.ge.s32.totalorder %v176_v44, 2147490202 }
  0x2c   :  { %vm108_vm3 = vcmp.ge.s32.totalorder %v177_v45, 2147490202  ;;  %v119_v47 = vsel %vm99_vm0, %v111_v38, 0.0  ;;  %v120_v48 = vsel %vm102_vm1, %v112_v39, 0.0  ;;  %v121_v49 = vsel %vm105_vm2, %v113_v40, 0.0 }
  0x2d   :  { %v122_v50 = vsel %vm108_vm3, %v114_v41, 0.0  ;;  %v133_v51 = vadd.f32 %v125_v31, %v119_v47  ;;  %v134_v52 = vadd.f32 %v126_v32, %v120_v48  ;;  %v135_v53 = vadd.f32 %v127_v33, %v121_v49 }
  0x2e   :  { %v136_v54 = vadd.f32 %v128_v46, %v122_v50 }
  0x2f   :  { %v141_v55 = vrot.slane %v134_v52, 7  ;;  %v142_v56 = vrot.slane %v135_v53, 6 }
  0x30   :  { %v143_v57 = vrot.slane %v136_v54, 5 }
  0x31   :  { %v145_v58 = vsel %vm144_vm4, %v133_v51, %v141_v55 }
  0x32   :  { %v147_v59 = vsel %vm146_vm5, %v142_v56, %v143_v57 }
  0x33   :  { %v149_v60 = vsel %vm148_vm6, %v145_v58, %v147_v59 }
  0x34   :  { %155 = vst.msk [vmem:[#allocation10] sm:$0xf] %vm153_vm7, %v149_v60 }
  0x35   :  { %166 = dma.vmem_to_hbm [thread:$0]  %s162_s3, 64, %s164_s8, [#allocation6]  }
  0x36   :  { %282 = dma.done.wait [#allocation6], 64  }
  0x37   :  { %283 = vsyncadd [#allocation6], 4294967232 }
  0x38   :  { %171 = vsyncpa [#allocation5], 1 }
  0x39   :  { %172 = vsyncpa [#allocation8], 1 }
  0x3a   :  { %173 = vsyncpa [#allocation6], 1 }

</bundles_post_ra>
